<compile_context>
chip_gen: v5e
topology: v5e:2x2
jax: 0.10.0
libtpu: 0.0.40
codegen_flags: <defaults>
</compile_context>

<pallas_src>
import jax
import jax.numpy as jnp
from jax.experimental import pallas as pl
from jax.experimental.pallas import tpu as pltpu

EMBED_DIM = 117          # item embedding width (logical)
DIM = 117                # conv width (logical); lin1 in_features 234 = 2 * dim
HID = 51                 # lin1 out_features (logical)
RATIO = 0.8
NUM_EMBEDDINGS = 390

F_PAD = 128              # 117 -> 128 (lane-dense feature width)
HID_PAD = 64             # 51  -> 64  (head hidden width)
SCORE_LANE = 117         # first zero-padded lane of h; carries the TopK score
MIN_TILE_N = 16          # bf16 sublane packing granularity
MAX_TILE_N = 1024        # amortizes ~0.35us/step overhead; a few MB of VMEM max
SPLIT_THRESHOLD = 64     # force >=2 grid steps (v7x megacore) above this size

_VMEM = pl.BlockSpec(memory_space=pltpu.MemorySpace.VMEM)


def _round_up(v, m):
    return (v + m - 1) // m * m


def _node_tiling(n):
    n16 = _round_up(max(n, 1), MIN_TILE_N)
    steps = -(-n16 // MAX_TILE_N)
    if steps < 2 and n16 >= SPLIT_THRESHOLD:
        steps = 2                         # keep both v7x TensorCores busy
    tile = _round_up(-(-n16 // steps), MIN_TILE_N)
    return tile * steps, tile


# ----------------------------- Pallas kernels -----------------------------

def _conv_pool_kernel(aggr_ref, x_ref, wrel_ref, wroot_ref, b_ref, pw_ref, o_ref):
    # GraphConv + ReLU:  h = relu(aggr @ w_rel + x @ w_root + b_rel)
    h = jnp.dot(aggr_ref[...], wrel_ref[...], preferred_element_type=jnp.float32)
    h = h + jnp.dot(x_ref[...], wroot_ref[...], preferred_element_type=jnp.float32)
    h = jnp.maximum(h + b_ref[...], 0.0)
    # TopKPooling score: tanh(h . (w / ||w||)) -- VPU multiply + lane reduce (XLU),
    # pooling weight pre-normalized at parameter-prep time; tanh on the EUP.
    s = jnp.tanh(jnp.sum(h * pw_ref[...], axis=-1, keepdims=True))
    # TopKPooling feature rescale fused in; pack the score into the zero-padded
    # lane SCORE_LANE (zero-weighted downstream), avoiding a (tile, 1) output.
    out = h * s
    lane = jax.lax.broadcasted_iota(jnp.int32, out.shape, 1)
    out = jnp.where(lane == SCORE_LANE, s, out)
    o_ref[...] = out.astype(o_ref.dtype)


def conv_pool(x, aggr, w_rel, w_root, b, pool_w, tile):
    """Fused GraphConv + ReLU + TopK score + rescale over node tiles (bf16 I/O)."""
    n_pad = x.shape[0]
    grid = (n_pad // tile,)
    flops = 4 * n_pad * F_PAD * F_PAD + 6 * n_pad * F_PAD
    bytes_accessed = (2 * 3 * n_pad * F_PAD            # aggr + x in, h out (bf16)
                      + 2 * 2 * F_PAD * F_PAD           # w_rel + w_root (bf16)
                      + 4 * 2 * F_PAD)                  # bias + pool weight (f32)
    return pl.pallas_call(
        _conv_pool_kernel,
        out_shape=jax.ShapeDtypeStruct((n_pad, F_PAD), jnp.bfloat16),
        grid_spec=pltpu.PrefetchScalarGridSpec(
            num_scalar_prefetch=0,
            grid=grid,
            in_specs=[
                pl.BlockSpec((tile, F_PAD), lambda i: (i, 0)),   # aggregated messages
                pl.BlockSpec((tile, F_PAD), lambda i: (i, 0)),   # root node features
                pl.BlockSpec((F_PAD, F_PAD), lambda i: (0, 0),
                             pipeline_mode=pl.Buffered(1)),      # w_rel (resident)
                pl.BlockSpec((F_PAD, F_PAD), lambda i: (0, 0),
                             pipeline_mode=pl.Buffered(1)),      # w_root (resident)
                pl.BlockSpec((1, F_PAD), lambda i: (0, 0),
                             pipeline_mode=pl.Buffered(1)),      # bias
                pl.BlockSpec((1, F_PAD), lambda i: (0, 0),
                             pipeline_mode=pl.Buffered(1)),      # normalized pool weight
            ],
            out_specs=pl.BlockSpec((tile, F_PAD), lambda i: (i, 0)),
        ),
        compiler_params=pltpu.CompilerParams(
            dimension_semantics=("parallel",),
            vmem_limit_bytes=32 * 1024 * 1024,
        ),
        cost_estimate=pl.CostEstimate(
            flops=flops, transcendentals=n_pad, bytes_accessed=bytes_accessed),
    )(aggr, x, w_rel, w_root, b, pool_w)


def _head_kernel(x1_ref, x2_ref, w1_ref, b1_ref, w3_ref, b3_ref, o_ref):
    feat = x1_ref[...] + x2_ref[...]                  # x = x1 + x2, fused
    h = jnp.dot(feat, w1_ref[...], preferred_element_type=jnp.float32) + b1_ref[...]
    h = jnp.maximum(h, 0.0)
    # F.dropout(p=0.5) is the identity in eval mode.
    # TODO(synk): training-mode dropout would use pltpu.prng_seed / prng_random_bits.
    z = jnp.dot(h, w3_ref[...], preferred_element_type=jnp.float32) + b3_ref[...]
    o_ref[...] = jax.nn.sigmoid(z)                    # lane-dense [B, 128]; col 0 real


def mlp_head(x1, x2, w1, b1, w3, b3):
    bsz = x1.shape[0]
    return pl.pallas_call(
        _head_kernel,
        out_shape=jax.ShapeDtypeStruct((bsz, F_PAD), jnp.float32),
        in_specs=[_VMEM] * 6,
        out_specs=_VMEM,
    )(x1, x2, w1, b1, w3, b3)


# ----------------------- JAX glue (sparse / data-dependent) -----------------------

def graph_aggregate(x, edge_index, edge_mask, num_nodes):
    # PyG GraphConv (aggr='add'): sum of source features over incoming edges.
    # Gather reads bf16 (half traffic); accumulate in f32 for precision.
    # TODO(synk): for E >> 100k, fuse into conv_pool via a CSR (sorted-by-dest)
    # scalar-prefetch DMA/accumulate kernel; XLA segment_sum is fine at this scale.
    src, dst = edge_index[0], edge_index[1]
    msg = jnp.where(edge_mask[:, None], x[src], jnp.zeros((), x.dtype))
    aggr = jax.ops.segment_sum(msg.astype(jnp.float32), dst, num_segments=num_nodes)
    return aggr.astype(jnp.bfloat16)


def topk_keep_mask(score, batch, node_mask, ratio, num_graphs):
    # Per-graph: keep the ceil(ratio * n_valid) highest-scoring valid nodes.
    # O(N log N) stable sort by (graph id, -score); lower index wins on ties
    # (torch.topk tie order is unspecified, so exact-tie sets may differ).
    n = score.shape[0]
    s = jnp.where(node_mask, score, -jnp.inf)
    counts = jax.ops.segment_sum(node_mask.astype(jnp.int32), batch, num_segments=num_graphs)
    k = jnp.ceil(ratio * counts.astype(jnp.float32)).astype(jnp.int32)

    idx = jnp.arange(n, dtype=jnp.int32)
    sorted_batch, _, sorted_idx = jax.lax.sort(
        (batch.astype(jnp.int32), -s, idx), num_keys=2, is_stable=True)

    graph_sizes = jax.ops.segment_sum(jnp.ones((n,), jnp.int32), batch,
                                      num_segments=num_graphs)
    graph_start = jnp.cumsum(graph_sizes) - graph_sizes
    rank_sorted = jnp.arange(n, dtype=jnp.int32) - graph_start[sorted_batch]
    keep_sorted = rank_sorted < k[sorted_batch]

    keep = jnp.zeros((n,), dtype=bool).at[sorted_idx].set(keep_sorted)
    return keep & node_mask


def global_max_mean(x, batch, node_mask, num_graphs):
    # [gmp(x, batch), gap(x, batch)] over valid nodes only (f32 accumulation).
    x = x.astype(jnp.float32)
    cnt = jax.ops.segment_sum(node_mask.astype(jnp.float32), batch, num_segments=num_graphs)
    xm = jnp.where(node_mask[:, None], x, -jnp.inf)
    gmax = jax.ops.segment_max(xm, batch, num_segments=num_graphs)
    gmax = jnp.where(cnt[:, None] > 0, gmax, 0.0)          # guard empty graphs
    xs = jnp.where(node_mask[:, None], x, 0.0)
    gsum = jax.ops.segment_sum(xs, batch, num_segments=num_graphs)
    gmean = gsum / jnp.maximum(cnt[:, None], 1.0)
    return jnp.concatenate([gmax, gmean], axis=1)          # (B, 2*F_PAD)


# ----------------------------- Full forward -----------------------------

def net_forward(params, x_idx, edge_index, batch, num_graphs):
    n_real = x_idx.shape[0]
    n_pad, tile = _node_tiling(n_real)
    pad = n_pad - n_real

    # item_embedding + squeeze(1), zero-pad node slots to the tile boundary (bf16).
    h = params["embedding"][x_idx.astype(jnp.int32).reshape(-1)]          # (N, 128) bf16
    h = jnp.pad(h, ((0, pad), (0, 0)))
    batch_p = jnp.pad(batch.astype(jnp.int32), (0, pad))                  # padded -> graph 0
    node_mask = jnp.arange(n_pad) < n_real
    edge_mask = jnp.ones((edge_index.shape[1],), dtype=bool)

    # conv1 + ReLU + pool1 score + rescale (fused Pallas kernel; score in lane 117)
    aggr = graph_aggregate(h, edge_index, edge_mask, n_pad)
    h = conv_pool(h, aggr, params["conv1_w_rel"], params["conv1_w_root"],
                  params["conv1_b"], params["pool1_w"], tile)
    score1 = h[:, SCORE_LANE].astype(jnp.float32)
    keep1 = topk_keep_mask(score1, batch_p, node_mask, RATIO, num_graphs)
    edge_mask = keep1[edge_index[0]] & keep1[edge_index[1]]
    x1 = global_max_mean(h, batch_p, keep1, num_graphs)                   # (B, 256)

    # conv2 + ReLU + pool2 score + rescale
    aggr = graph_aggregate(h, edge_index, edge_mask, n_pad)
    h = conv_pool(h, aggr, params["conv2_w_rel"], params["conv2_w_root"],
                  params["conv2_b"], params["pool2_w"], tile)
    score2 = h[:, SCORE_LANE].astype(jnp.float32)
    keep2 = topk_keep_mask(score2, batch_p, keep1, RATIO, num_graphs)
    x2 = global_max_mean(h, batch_p, keep2, num_graphs)                   # (B, 256)

    # head: (x1 + x2) -> lin1 -> ReLU -> dropout(eval) -> lin3 -> sigmoid  (fused)
    out = mlp_head(x1, x2, params["lin1_w"], params["lin1_b"],
                   params["lin3_w"], params["lin3_b"])                    # (B, 128)
    return out[:, 0]                                                      # squeeze(1) -> (B,)


# ----------------------------- Parameters -----------------------------

def init_params(key):
    """Logical-shape parameters (117 / 234 / 51), as in the PyTorch module."""
    ks = jax.random.split(key, 12)

    def w(k, shape, scale=0.1):
        return (scale * jax.random.normal(k, shape)).astype(jnp.float32)

    return {
        "embedding":    w(ks[0], (NUM_EMBEDDINGS, EMBED_DIM)),
        "conv1_w_rel":  w(ks[1], (EMBED_DIM, DIM)),
        "conv1_b_rel":  w(ks[2], (DIM,)),
        "conv1_w_root": w(ks[3], (EMBED_DIM, DIM)),
        "pool1_w":      w(ks[4], (DIM,)),
        "conv2_w_rel":  w(ks[5], (DIM, DIM)),
        "conv2_b_rel":  w(ks[6], (DIM,)),
        "conv2_w_root": w(ks[7], (DIM, DIM)),
        "pool2_w":      w(ks[8], (DIM,)),
        "lin1_w":       w(ks[9], (2 * DIM, HID)),
        "lin1_b":       w(ks[10], (HID,)),
        "lin3_w":       w(ks[11], (HID, 1)),
        "lin3_b":       jnp.zeros((1,), jnp.float32),
    }


def prepare_params(p):
    """One-time pad / normalize / cast into hardware-friendly shapes.  Zero padding
    (lanes 117..127 of every weight row/col) keeps the math identical to the
    117-dim model; bf16 storage on node-side tensors halves HBM traffic."""
    def pad2(a, r, c):
        return jnp.pad(a, ((0, r - a.shape[0]), (0, c - a.shape[1])))

    emb = jnp.pad(p["embedding"], ((0, 0), (0, F_PAD - EMBED_DIM))).astype(jnp.bfloat16)

    def conv(w_rel, b_rel, w_root):
        return (pad2(w_rel, F_PAD, F_PAD).astype(jnp.bfloat16),
                pad2(w_root, F_PAD, F_PAD).astype(jnp.bfloat16),
                jnp.pad(b_rel, (0, F_PAD - DIM)).reshape(1, F_PAD).astype(jnp.float32))

    def pool(w):
        wn = w / jnp.sqrt(jnp.sum(w * w))                # pre-normalize ||w|| once
        return jnp.pad(wn, (0, F_PAD - DIM)).reshape(1, F_PAD).astype(jnp.float32)

    c1r, c1o, c1b = conv(p["conv1_w_rel"], p["conv1_b_rel"], p["conv1_w_root"])
    c2r, c2o, c2b = conv(p["conv2_w_rel"], p["conv2_b_rel"], p["conv2_w_root"])

    # lin1: remap 234 logical rows ([gmax 117 | gmean 117]) into padded layout
    # ([gmax 128 | gmean 128]); padded rows/cols (incl. the score lane 117) are zero.
    lin1 = jnp.zeros((2 * F_PAD, HID_PAD), jnp.float32)
    lin1 = lin1.at[0:DIM, 0:HID].set(p["lin1_w"][0:DIM])
    lin1 = lin1.at[F_PAD:F_PAD + DIM, 0:HID].set(p["lin1_w"][DIM:2 * DIM])
    lin1_b = jnp.pad(p["lin1_b"], (0, HID_PAD - HID)).reshape(1, HID_PAD)

    lin3 = jnp.zeros((HID_PAD, F_PAD), jnp.float32).at[0:HID, 0:1].set(p["lin3_w"])
    lin3_b = jnp.zeros((1, F_PAD), jnp.float32).at[0, 0].set(p["lin3_b"][0])

    return {
        "embedding": emb,
        "conv1_w_rel": c1r, "conv1_w_root": c1o, "conv1_b": c1b, "pool1_w": pool(p["pool1_w"]),
        "conv2_w_rel": c2r, "conv2_w_root": c2o, "conv2_b": c2b, "pool2_w": pool(p["pool2_w"]),
        "lin1_w": lin1, "lin1_b": lin1_b,
        "lin3_w": lin3, "lin3_b": lin3_b,
    }


# ----------------------------- Demo -----------------------------

if __name__ == "__main__":
    key = jax.random.PRNGKey(0)
    pkey, xkey = jax.random.split(key)
    params = prepare_params(init_params(pkey))

    # Two graphs, 6 nodes each (N = 12).
    N = 12
    num_graphs = 2
    x_idx = jax.random.randint(xkey, (N, 1), 0, NUM_EMBEDDINGS, dtype=jnp.int32)
    batch = jnp.array([0] * 6 + [1] * 6, dtype=jnp.int32)

    # Chain edges (both directions) within each graph.
    def chain_edges(offset, n):
        src, dst = [], []
        for i in range(n - 1):
            src += [offset + i, offset + i + 1]
            dst += [offset + i + 1, offset + i]
        return src, dst

    s0, d0 = chain_edges(0, 6)
    s1, d1 = chain_edges(6, 6)
    edge_index = jnp.array([s0 + s1, d0 + d1], dtype=jnp.int32)            # (2, 20)

    fwd = jax.jit(net_forward, static_argnames=("num_graphs",))
    out = fwd(params, x_idx, edge_index, batch, num_graphs=num_graphs)
    out = jax.block_until_ready(out)
    assert out.shape == (num_graphs,)
    assert bool(jnp.all((out >= 0.0) & (out <= 1.0)))
    print("KERNEL_OK")
</pallas_src>

<mosaic_0001>
module attributes {stable_mosaic.version = 11 : i64} {
  func.func @_conv_pool_kernel(%arg0: i32, %arg1: memref<16x128xbf16, #tpu.memory_space<vmem>>, %arg2: memref<16x128xbf16, #tpu.memory_space<vmem>>, %arg3: memref<128x128xbf16, #tpu.memory_space<vmem>>, %arg4: memref<128x128xbf16, #tpu.memory_space<vmem>>, %arg5: memref<1x128xf32, #tpu.memory_space<vmem>>, %arg6: memref<1x128xf32, #tpu.memory_space<vmem>>, %arg7: memref<16x128xbf16, #tpu.memory_space<vmem>>) attributes {dimension_semantics = [#tpu.dimension_semantics<parallel>], iteration_bounds = array<i64: 1>, scalar_prefetch = 0 : i64, scratch_operands = 0 : i64, tpu.core_type = #tpu.core_type<tc>, window_params = [{transform_indices = @transform_0, window_bounds = array<i64: 16, 128>}, {transform_indices = @transform_1, window_bounds = array<i64: 16, 128>}, {pipeline_mode = #tpu.pipeline_mode<synchronous>, transform_indices = @transform_2, window_bounds = array<i64: 128, 128>}, {pipeline_mode = #tpu.pipeline_mode<synchronous>, transform_indices = @transform_3, window_bounds = array<i64: 128, 128>}, {pipeline_mode = #tpu.pipeline_mode<synchronous>, transform_indices = @transform_4, window_bounds = array<i64: 1, 128>}, {pipeline_mode = #tpu.pipeline_mode<synchronous>, transform_indices = @transform_5, window_bounds = array<i64: 1, 128>}, {transform_indices = @transform_6, window_bounds = array<i64: 16, 128>}]} {
    %c0 = arith.constant 0 : index
    %c0_0 = arith.constant 0 : index
    %0 = vector.load %arg1[%c0, %c0_0] : memref<16x128xbf16, #tpu.memory_space<vmem>>, vector<16x128xbf16>
    %c0_1 = arith.constant 0 : index
    %c0_2 = arith.constant 0 : index
    %1 = vector.load %arg3[%c0_1, %c0_2] : memref<128x128xbf16, #tpu.memory_space<vmem>>, vector<128x128xbf16>
    %cst = arith.constant dense<0.000000e+00> : vector<16x128xf32>
    %2 = tpu.matmul %0, %1, %cst {dimension_numbers = #tpu.dot_dimension_numbers<[1], [0], [0], [1], [0, 0, 1, 1], [], []>} : vector<16x128xbf16>, vector<128x128xbf16>, vector<16x128xf32> -> vector<16x128xf32>
    %c0_3 = arith.constant 0 : index
    %c0_4 = arith.constant 0 : index
    %3 = vector.load %arg2[%c0_3, %c0_4] : memref<16x128xbf16, #tpu.memory_space<vmem>>, vector<16x128xbf16>
    %c0_5 = arith.constant 0 : index
    %c0_6 = arith.constant 0 : index
    %4 = vector.load %arg4[%c0_5, %c0_6] : memref<128x128xbf16, #tpu.memory_space<vmem>>, vector<128x128xbf16>
    %cst_7 = arith.constant dense<0.000000e+00> : vector<16x128xf32>
    %5 = tpu.matmul %3, %4, %cst_7 {dimension_numbers = #tpu.dot_dimension_numbers<[1], [0], [0], [1], [0, 0, 1, 1], [], []>} : vector<16x128xbf16>, vector<128x128xbf16>, vector<16x128xf32> -> vector<16x128xf32>
    %6 = arith.addf %2, %5 : vector<16x128xf32>
    %c0_8 = arith.constant 0 : index
    %c0_9 = arith.constant 0 : index
    %7 = vector.load %arg5[%c0_8, %c0_9] : memref<1x128xf32, #tpu.memory_space<vmem>>, vector<1x128xf32>
    %8 = vector.broadcast %7 : vector<1x128xf32> to vector<16x128xf32>
    %9 = arith.addf %6, %8 : vector<16x128xf32>
    %cst_10 = arith.constant 0.000000e+00 : f32
    %10 = vector.broadcast %cst_10 : f32 to vector<16x128xf32>
    %11 = arith.maximumf %9, %10 : vector<16x128xf32>
    %c0_11 = arith.constant 0 : index
    %c0_12 = arith.constant 0 : index
    %12 = vector.load %arg6[%c0_11, %c0_12] : memref<1x128xf32, #tpu.memory_space<vmem>>, vector<1x128xf32>
    %13 = vector.broadcast %12 : vector<1x128xf32> to vector<16x128xf32>
    %14 = arith.mulf %11, %13 : vector<16x128xf32>
    %cst_13 = arith.constant dense<0.000000e+00> : vector<16xf32>
    %15 = vector.multi_reduction <add>, %14, %cst_13 [1] : vector<16x128xf32> to vector<16xf32>
    %16 = vector.shape_cast %15 : vector<16xf32> to vector<16x1xf32>
    %17 = math.tanh %16 : vector<16x1xf32>
    %18 = vector.broadcast %17 : vector<16x1xf32> to vector<16x128xf32>
    %19 = arith.mulf %11, %18 : vector<16x128xf32>
    %20 = tpu.iota {dimensions = array<i32: 1>} : vector<16x128xi32>
    %c117_i32 = arith.constant 117 : i32
    %21 = vector.broadcast %c117_i32 : i32 to vector<16x128xi32>
    %22 = arith.cmpi eq, %20, %21 : vector<16x128xi32>
    %23 = vector.shape_cast %17 : vector<16x1xf32> to vector<16x1xf32>
    %24 = vector.broadcast %23 : vector<16x1xf32> to vector<16x128xf32>
    %25 = arith.select %22, %24, %19 : vector<16x128xi1>, vector<16x128xf32>
    %26 = arith.truncf %25 : vector<16x128xf32> to vector<16x128xbf16>
    %c0_14 = arith.constant 0 : index
    %c0_15 = arith.constant 0 : index
    %27 = vector.load %arg7[%c0_14, %c0_15] : memref<16x128xbf16, #tpu.memory_space<vmem>>, vector<16x128xbf16>
    tpu.vector_store %arg7[%c0_14, %c0_15], %26 {strides = array<i32>} : memref<16x128xbf16, #tpu.memory_space<vmem>>, vector<16x128xbf16>,
    return
  }
  func.func @transform_0(%arg0: i32) -> (i32, i32) {
    %c0_i32 = arith.constant 0 : i32
    %c0_i32_0 = arith.constant 0 : i32
    return %arg0, %c0_i32 : i32, i32
  }
  func.func @transform_1(%arg0: i32) -> (i32, i32) {
    %c0_i32 = arith.constant 0 : i32
    %c0_i32_0 = arith.constant 0 : i32
    return %arg0, %c0_i32 : i32, i32
  }
  func.func @transform_2(%arg0: i32) -> (i32, i32) {
    %c0_i32 = arith.constant 0 : i32
    %c0_i32_0 = arith.constant 0 : i32
    %c0_i32_1 = arith.constant 0 : i32
    return %c0_i32, %c0_i32_0 : i32, i32
  }
  func.func @transform_3(%arg0: i32) -> (i32, i32) {
    %c0_i32 = arith.constant 0 : i32
    %c0_i32_0 = arith.constant 0 : i32
    %c0_i32_1 = arith.constant 0 : i32
    return %c0_i32, %c0_i32_0 : i32, i32
  }
  func.func @transform_4(%arg0: i32) -> (i32, i32) {
    %c0_i32 = arith.constant 0 : i32
    %c0_i32_0 = arith.constant 0 : i32
    %c0_i32_1 = arith.constant 0 : i32
    return %c0_i32, %c0_i32_0 : i32, i32
  }
  func.func @transform_5(%arg0: i32) -> (i32, i32) {
    %c0_i32 = arith.constant 0 : i32
    %c0_i32_0 = arith.constant 0 : i32
    %c0_i32_1 = arith.constant 0 : i32
    return %c0_i32, %c0_i32_0 : i32, i32
  }
  func.func @transform_6(%arg0: i32) -> (i32, i32) {
    %c0_i32 = arith.constant 0 : i32
    %c0_i32_0 = arith.constant 0 : i32
    return %arg0, %c0_i32 : i32, i32
  }
}

module attributes {stable_mosaic.version = 11 : i64} {
  func.func @_head_kernel(%arg0: memref<2x256xf32, #tpu.memory_space<vmem>>, %arg1: memref<2x256xf32, #tpu.memory_space<vmem>>, %arg2: memref<256x64xf32, #tpu.memory_space<vmem>>, %arg3: memref<1x64xf32, #tpu.memory_space<vmem>>, %arg4: memref<64x128xf32, #tpu.memory_space<vmem>>, %arg5: memref<1x128xf32, #tpu.memory_space<vmem>>, %arg6: memref<2x128xf32, #tpu.memory_space<vmem>>) attributes {dimension_semantics = [], scalar_prefetch = 0 : i64, scratch_operands = 0 : i64, tpu.core_type = #tpu.core_type<tc>} {
    %c0 = arith.constant 0 : index
    %c0_0 = arith.constant 0 : index
    %0 = vector.load %arg0[%c0, %c0_0] : memref<2x256xf32, #tpu.memory_space<vmem>>, vector<2x256xf32>
    %c0_1 = arith.constant 0 : index
    %c0_2 = arith.constant 0 : index
    %1 = vector.load %arg1[%c0_1, %c0_2] : memref<2x256xf32, #tpu.memory_space<vmem>>, vector<2x256xf32>
    %2 = arith.addf %0, %1 : vector<2x256xf32>
    %c0_3 = arith.constant 0 : index
    %c0_4 = arith.constant 0 : index
    %3 = vector.load %arg2[%c0_3, %c0_4] : memref<256x64xf32, #tpu.memory_space<vmem>>, vector<256x64xf32>
    %cst = arith.constant dense<0.000000e+00> : vector<2x64xf32>
    %4 = tpu.matmul %2, %3, %cst {dimension_numbers = #tpu.dot_dimension_numbers<[1], [0], [0], [1], [0, 0, 1, 1], [], []>} : vector<2x256xf32>, vector<256x64xf32>, vector<2x64xf32> -> vector<2x64xf32>
    %c0_5 = arith.constant 0 : index
    %c0_6 = arith.constant 0 : index
    %5 = vector.load %arg3[%c0_5, %c0_6] : memref<1x64xf32, #tpu.memory_space<vmem>>, vector<1x64xf32>
    %6 = vector.broadcast %5 : vector<1x64xf32> to vector<2x64xf32>
    %7 = arith.addf %4, %6 : vector<2x64xf32>
    %cst_7 = arith.constant 0.000000e+00 : f32
    %8 = vector.broadcast %cst_7 : f32 to vector<2x64xf32>
    %9 = arith.maximumf %7, %8 : vector<2x64xf32>
    %c0_8 = arith.constant 0 : index
    %c0_9 = arith.constant 0 : index
    %10 = vector.load %arg4[%c0_8, %c0_9] : memref<64x128xf32, #tpu.memory_space<vmem>>, vector<64x128xf32>
    %cst_10 = arith.constant dense<0.000000e+00> : vector<2x128xf32>
    %11 = tpu.matmul %9, %10, %cst_10 {dimension_numbers = #tpu.dot_dimension_numbers<[1], [0], [0], [1], [0, 0, 1, 1], [], []>} : vector<2x64xf32>, vector<64x128xf32>, vector<2x128xf32> -> vector<2x128xf32>
    %c0_11 = arith.constant 0 : index
    %c0_12 = arith.constant 0 : index
    %12 = vector.load %arg5[%c0_11, %c0_12] : memref<1x128xf32, #tpu.memory_space<vmem>>, vector<1x128xf32>
    %13 = vector.broadcast %12 : vector<1x128xf32> to vector<2x128xf32>
    %14 = arith.addf %11, %13 : vector<2x128xf32>
    %15 = arith.negf %14 : vector<2x128xf32>
    %16 = math.exp %15 : vector<2x128xf32>
    %cst_13 = arith.constant 1.000000e+00 : f32
    %17 = vector.broadcast %cst_13 : f32 to vector<2x128xf32>
    %18 = arith.addf %17, %16 : vector<2x128xf32>
    %19 = arith.divf %17, %18 : vector<2x128xf32>
    %c0_14 = arith.constant 0 : index
    %c0_15 = arith.constant 0 : index
    %20 = vector.load %arg6[%c0_14, %c0_15] : memref<2x128xf32, #tpu.memory_space<vmem>>, vector<2x128xf32>
    tpu.vector_store %arg6[%c0_14, %c0_15], %19 {strides = array<i32>} : memref<2x128xf32, #tpu.memory_space<vmem>>, vector<2x128xf32>,
    return
  }
}

</mosaic_0001>

<bundles_post_ra>
// kernel: net_forward.3
= control target key start
LH: loop header
LB: loop body
LE: loop exit
PB: predicated region body
PF: predicated region fallthrough
CT: control target
= control target key end

     0   :  { %v217_v33 = vlaneseq  ;;  %s429_s3 = inlined_call_operand.vmem [shape: bf16[128,128], index: 3, kind: input, shape index: {}]   ;;  %s430_s2 = inlined_call_operand.vmem [shape: bf16[128,128], index: 2, kind: input, shape index: {}]   ;;  %s431_s1 = inlined_call_operand.vmem [shape: bf16[16,128], index: 1, kind: input, shape index: {}]   ;;  %s432_s0 = inlined_call_operand.vmem [shape: bf16[16,128], index: 0, kind: input, shape index: {}]   ;;  %s433_s4 = inlined_call_operand.vmem [shape: f32[1,128], index: 4, kind: input, shape index: {}]   ;;  %s434_s5 = inlined_call_operand.vmem [shape: f32[1,128], index: 5, kind: input, shape index: {}]   ;;  %s435_s6 = inlined_call_operand.vmem [shape: bf16[16,128], index: 6, kind: output, shape index: {}]  }
   0x1   :  { %v319_v0 = vld [vmem:[%s429_s3 + $0x38] sm:$0xff]  ;;  %v318_v2 = vld [vmem:[%s429_s3 + $0x30] sm:$0xff]  ;;  %v317_v4 = vld [vmem:[%s429_s3 + $0x28] sm:$0xff] }
   0x2   :  { %v310_v1 = vld [vmem:[%s430_s2 + $0x38] sm:$0xff]  ;;  %113 = vmatpush.bf16.msra.mxu0 %v319_v0  ;;  %v309_v3 = vld [vmem:[%s430_s2 + $0x30] sm:$0xff]  ;;  %v308_v5 = vld [vmem:[%s430_s2 + $0x28] sm:$0xff]  ;;  %v218_v36 = vand.u32 127, %v217_v33 }
   0x3   :  { %181 = vmatpush.bf16.msra.mxu1 %v310_v1  ;;  %v316_v6 = vld [vmem:[%s429_s3 + $0x20] sm:$0xff]  ;;  %v315_v8 = vld [vmem:[%s429_s3 + $0x18] sm:$0xff]  ;;  %v314_v10 = vld [vmem:[%s429_s3 + $0x10] sm:$0xff] }
   0x4   :  { %v307_v7 = vld [vmem:[%s430_s2 + $0x20] sm:$0xff]  ;;  %v306_v9 = vld [vmem:[%s430_s2 + $0x18] sm:$0xff]  ;;  %v305_v11 = vld [vmem:[%s430_s2 + $0x10] sm:$0xff]  ;;  %vm219_vm0 = vcmp.eq.s32.totalorder %v218_v36, 117 }
   0x5   :  { %v313_v12 = vld [vmem:[%s429_s3 + $0x8] sm:$0xff]  ;;  %v312_v14 = vld [vmem:[%s429_s3] sm:$0xff] }
   0x6   :  { %114 = vmatpush.bf16.msra.mxu0 %v318_v2  ;;  %v304_v13 = vld [vmem:[%s430_s2 + $0x8] sm:$0xff]  ;;  %v303_v15 = vld [vmem:[%s430_s2] sm:$0xff] }
   0x7   :  { %182 = vmatpush.bf16.msra.mxu1 %v309_v3  ;;  %v311_v16 = vld [vmem:[%s431_s1] sm:$0xff] }
   0x8   :  { %v302_v17 = vld [vmem:[%s432_s0] sm:$0xff] }
   0x9   :  { %v325_v18 = vld [vmem:[%s433_s4] ss:$0 sm:$0xff] }
   0xa   :  { %115 = vmatpush.bf16.msra.mxu0 %v317_v4  ;;  %v326_v23 = vld [vmem:[%s434_s5] ss:$0 sm:$0xff] }
   0xb   :  { %183 = vmatpush.bf16.msra.mxu1 %v308_v5 }
   0xe   :  { %116 = vmatpush.bf16.msra.mxu0 %v316_v6 }
   0xf   :  { %184 = vmatpush.bf16.msra.mxu1 %v307_v7 }
  0x12   :  { %117 = vmatpush.bf16.msra.mxu0 %v315_v8 }
  0x13   :  { %185 = vmatpush.bf16.msra.mxu1 %v306_v9 }
  0x16   :  { %118 = vmatpush.bf16.msra.mxu0 %v314_v10 }
  0x17   :  { %186 = vmatpush.bf16.msra.mxu1 %v305_v11 }
  0x1a   :  { %119 = vmatpush.bf16.msra.mxu0 %v313_v12 }
  0x1b   :  { %187 = vmatpush.bf16.msra.mxu1 %v304_v13 }
  0x1e   :  { %120 = vmatpush.bf16.msra.mxu0 %v312_v14 }
  0x1f   :  { %188 = vmatpush.bf16.msra.mxu1 %v303_v15 }
  0x21   :  { %121 = vmatmul.bf16.vlgmr.msra.gmra.mxu0 %v311_v16 }
  0x22   :  { %189 = vmatmul.bf16.vlgmr.msra.gmra.mxu1 %v302_v17 }
  0x9e   :  { %v122_v19 = vpop.f32.mrf.mxu0 }
  0x9f   :  { %v190_v20 = vpop.f32.mrf.mxu1 }
  0xa0   :  { %v191_v21 = vadd.f32 %v190_v20, %v122_v19 }
  0xa2   :  { %v199_v22 = vadd.f32 %v325_v18, %v191_v21 }
  0xa4   :  { %v201_v24 = vmax.f32 %v199_v22, 0.0 }
  0xa6   :  { %v207_v25 = vmul.f32 %v326_v23, %v201_v24  ;;  %v124_v26 = vpop.f32.mrf.mxu0 }
  0xa7   :  { %v192_v27 = vpop.f32.mrf.mxu1 }
  0xa8   :  { %v193_v28 = vadd.f32 %v192_v27, %v124_v26  ;;  %209 = vadd.xlane.f32.xlu0 %v207_v25 }
  0xaa   :  { %v200_v29 = vadd.f32 %v325_v18, %v193_v28 }
  0xac   :  { %v202_v30 = vmax.f32 %v200_v29, 0.0 }
  0xae   :  { %v208_v31 = vmul.f32 %v326_v23, %v202_v30 }
  0xb0   :  { %211 = vadd.xlane.f32.xlu0 %v208_v31 }
 0x11b   :  { %v210_v32 = vpop.xlane.xlu0 %209 }
 0x11c   :  { %327 = vtanh.f32 %v210_v32 }
 0x122   :  { %v328_v35 = vpop.eup %327 }
 0x123   :  { %v212_v34 = vpop.xlane.xlu0 %211  ;;  %v215_v37 = vmul.f32 %v328_v35, %v201_v24 }
 0x124   :  { %329 = vtanh.f32 %v212_v34 }
 0x125   :  { %v220_v40 = vsel %vm219_vm0, %v328_v35, %v215_v37 }
 0x12a   :  { %v330_v38 = vpop.eup %329 }
 0x12b   :  { %v216_v39 = vmul.f32 %v330_v38, %v202_v30 }
 0x12d   :  { %v221_v41 = vsel %vm219_vm0, %v330_v38, %v216_v39 }
 0x12e   :  { %v323_v42 = vpack.c.bf16 %v221_v41, %v220_v40 }
 0x130   :  { %324 = vst [vmem:[%s435_s6] sm:$0xff] %v323_v42  }

// kernel: net_forward.5
= control target key start
LH: loop header
LB: loop body
LE: loop exit
PB: predicated region body
PF: predicated region fallthrough
CT: control target
= control target key end

     0   :  { %vm121_vm0 = vcmask 523264   ;;  %s347_s2 = inlined_call_operand.vmem [shape: f32[256,64], index: 2, kind: input, shape index: {}]   ;;  %s348_s0 = inlined_call_operand.vmem [shape: f32[2,256], index: 0, kind: input, shape index: {}]   ;;  %s349_s1 = inlined_call_operand.vmem [shape: f32[2,256], index: 1, kind: input, shape index: {}]   ;;  %s350_s4 = inlined_call_operand.vmem [shape: f32[64,128], index: 4, kind: input, shape index: {}]   ;;  %s351_s3 = inlined_call_operand.vmem [shape: f32[1,64], index: 3, kind: input, shape index: {}]   ;;  %s352_s5 = inlined_call_operand.vmem [shape: f32[1,128], index: 5, kind: input, shape index: {}]   ;;  %s353_s6 = inlined_call_operand.vmem [shape: f32[2,128], index: 6, kind: output, shape index: {}]  }
   0x1   :  { %v41_v0 = vld [vmem:[%s347_s2 + $0x78] sm:$0xff]  ;;  %v40_v1 = vld [vmem:[%s347_s2 + $0x70] sm:$0xff]  ;;  %v39_v4 = vld [vmem:[%s347_s2 + $0x68] sm:$0xff] }
   0x2   :  { %v57_v2 = vld [vmem:[%s347_s2 + $0xf8] sm:$0xff]  ;;  %68 = vmatpush.msra.mxu0 %v41_v0  ;;  %v56_v3 = vld [vmem:[%s347_s2 + $0xf0] sm:$0xff]  ;;  %v55_v5 = vld [vmem:[%s347_s2 + $0xe8] sm:$0xff] }
   0x3   :  { %88 = vmatpush.msra.mxu1 %v57_v2  ;;  %v38_v6 = vld [vmem:[%s347_s2 + $0x60] sm:$0xff]  ;;  %v37_v8 = vld [vmem:[%s347_s2 + $0x58] sm:$0xff]  ;;  %v36_v10 = vld [vmem:[%s347_s2 + $0x50] sm:$0xff] }
   0x4   :  { %69 = vmatpush.msra.mxu0 %v40_v1  ;;  %v54_v7 = vld [vmem:[%s347_s2 + $0xe0] sm:$0xff]  ;;  %v53_v9 = vld [vmem:[%s347_s2 + $0xd8] sm:$0xff]  ;;  %v52_v11 = vld [vmem:[%s347_s2 + $0xd0] sm:$0xff] }
   0x5   :  { %89 = vmatpush.msra.mxu1 %v56_v3  ;;  %v35_v12 = vld [vmem:[%s347_s2 + $0x48] sm:$0xff]  ;;  %v23_v14 = vld [vmem:[%s348_s0] sm:$0xf]  ;;  %v116_v17 = vld [vmem:[%s350_s4 + $0x38] sm:$0xff] }
   0x6   :  { %70 = vmatpush.msra.mxu0 %v39_v4  ;;  %v51_v13 = vld [vmem:[%s347_s2 + $0xc8] sm:$0xff]  ;;  %v24_v15 = vld [vmem:[%s349_s1] sm:$0xf]  ;;  %v115_v18 = vld [vmem:[%s350_s4 + $0x30] sm:$0xff]  ;;  %133 = vmatpush.msra.mxu2 %v116_v17 }
   0x7   :  { %90 = vmatpush.msra.mxu1 %v55_v5  ;;  %v25_v16 = vadd.f32 %v24_v15, %v23_v14  ;;  %v34_v19 = vld [vmem:[%s347_s2 + $0x40] sm:$0xff]  ;;  %v114_v21 = vld [vmem:[%s350_s4 + $0x28] sm:$0xff]  ;;  %v33_v22 = vld [vmem:[%s347_s2 + $0x38] sm:$0xff] }
   0x8   :  { %71 = vmatpush.msra.mxu0 %v38_v6  ;;  %v50_v20 = vld [vmem:[%s347_s2 + $0xc0] sm:$0xff]  ;;  %v49_v23 = vld [vmem:[%s347_s2 + $0xb8] sm:$0xff]  ;;  %134 = vmatpush.msra.mxu2 %v115_v18  ;;  %v32_v25 = vld [vmem:[%s347_s2 + $0x30] sm:$0xff] }
   0x9   :  { %91 = vmatpush.msra.mxu1 %v54_v7  ;;  %63 = vst [vmem:[#allocation1] ss:$4 sm:$0xff] %v25_v16  ;;  %v113_v24 = vld [vmem:[%s350_s4 + $0x20] sm:$0xff]  ;;  %v48_v26 = vld [vmem:[%s347_s2 + $0xb0] sm:$0xff]  ;;  %v31_v27 = vld [vmem:[%s347_s2 + $0x28] sm:$0xff] }
   0xa   :  { %72 = vmatpush.msra.mxu0 %v37_v8  ;;  %135 = vmatpush.msra.mxu2 %v114_v21  ;;  %v47_v28 = vld [vmem:[%s347_s2 + $0xa8] sm:$0xff]  ;;  %v30_v29 = vld [vmem:[%s347_s2 + $0x20] sm:$0xff]  ;;  %v29_v31 = vld [vmem:[%s347_s2 + $0x18] sm:$0xff] }
   0xb   :  { %92 = vmatpush.msra.mxu1 %v53_v9  ;;  %v46_v30 = vld [vmem:[%s347_s2 + $0xa0] sm:$0xff]  ;;  %v45_v32 = vld [vmem:[%s347_s2 + $0x98] sm:$0xff]  ;;  %v28_v33 = vld [vmem:[%s347_s2 + $0x10] sm:$0xff] }
   0xc   :  { %73 = vmatpush.msra.mxu0 %v36_v10  ;;  %136 = vmatpush.msra.mxu2 %v113_v24  ;;  %v44_v34 = vld [vmem:[%s347_s2 + $0x90] sm:$0xff]  ;;  %v27_v35 = vld [vmem:[%s347_s2 + $0x8] sm:$0xff]  ;;  %v26_v37 = vld [vmem:[%s347_s2] sm:$0xff] }
   0xd   :  { %93 = vmatpush.msra.mxu1 %v52_v11  ;;  %v43_v36 = vld [vmem:[%s347_s2 + $0x88] sm:$0xff]  ;;  %v42_v38 = vld [vmem:[%s347_s2 + $0x80] sm:$0xff]  ;;  %v112_v41 = vld [vmem:[%s350_s4 + $0x18] sm:$0xff] }
   0xe   :  { %74 = vmatpush.msra.mxu0 %v35_v12  ;;  %137 = vmatpush.msra.mxu2 %v112_v41  ;;  %v111_v42 = vld [vmem:[%s350_s4 + $0x10] sm:$0xff]  ;;  %v110_v43 = vld [vmem:[%s350_s4 + $0x8] sm:$0xff]  ;;  %v109_v44 = vld [vmem:[%s350_s4] sm:$0xff] }
   0xf   :  { %94 = vmatpush.msra.mxu1 %v51_v13  ;;  %v171_v45 = vld [vmem:[%s351_s3] ss:$0 sm:$0xff] }
  0x10   :  { %75 = vmatpush.msra.mxu0 %v34_v19  ;;  %v64_v39 = vld.sshfl [vmem:[#allocation1] sm:$0xff pattern:$0x73625140]  ;;  %v65_v40 = vld.sshfl [vmem:[#allocation1 + $0x8] sm:$0xff pattern:$0x73625140]  ;;  %138 = vmatpush.msra.mxu2 %v111_v42 }
  0x11   :  { %95 = vmatpush.msra.mxu1 %v50_v20  ;;  %v172_v51 = vld [vmem:[%s352_s5] ss:$0 sm:$0xff] }
  0x12   :  { %76 = vmatpush.msra.mxu0 %v33_v22  ;;  %139 = vmatpush.msra.mxu2 %v110_v43 }
  0x13   :  { %96 = vmatpush.msra.mxu1 %v49_v23 }
  0x14   :  { %77 = vmatpush.msra.mxu0 %v32_v25  ;;  %140 = vmatpush.msra.mxu2 %v109_v44 }
  0x15   :  { %97 = vmatpush.msra.mxu1 %v48_v26 }
  0x16   :  { %78 = vmatpush.msra.mxu0 %v31_v27 }
  0x17   :  { %98 = vmatpush.msra.mxu1 %v47_v28 }
  0x18   :  { %79 = vmatpush.msra.mxu0 %v30_v29 }
  0x19   :  { %99 = vmatpush.msra.mxu1 %v46_v30 }
  0x1a   :  { %80 = vmatpush.msra.mxu0 %v29_v31 }
  0x1b   :  { %100 = vmatpush.msra.mxu1 %v45_v32 }
  0x1c   :  { %81 = vmatpush.msra.mxu0 %v28_v33 }
  0x1d   :  { %101 = vmatpush.msra.mxu1 %v44_v34 }
  0x1e   :  { %82 = vmatpush.msra.mxu0 %v27_v35 }
  0x1f   :  { %102 = vmatpush.msra.mxu1 %v43_v36 }
  0x20   :  { %83 = vmatpush.msra.mxu0 %v26_v37 }
  0x21   :  { %103 = vmatpush.msra.mxu1 %v42_v38  ;;  %84 = vmatmul.f32.vlgmr.msra.gmra.mxu0 %v64_v39 }
  0x22   :  { %104 = vmatmul.f32.vlgmr.msra.gmra.mxu1 %v65_v40 }
  0x9e   :  { %v85_v46 = vpop.f32.mrf.mxu0 }
  0x9f   :  { %v105_v47 = vpop.f32.mrf.mxu1  ;;  %v86_v48 = vadd.f32 %v171_v45, %v85_v46 }
  0xa1   :  { %v106_v49 = vadd.f32 %v105_v47, %v86_v48 }
  0xa3   :  { %v108_v50 = vmax.f32 %v106_v49, 0.0 }
  0xa5   :  { %169 = vmatmul.msk.f32.vlgmr.msra.gmra.mxu2 %vm121_vm0, %v108_v50 }
 0x128   :  { %v142_v52 = vpop.f32.mrf.mxu2 }
 0x129   :  { %v143_v53 = vadd.f32 %v172_v51, %v142_v52 }
 0x12b   :  { %v170_v54 = vmul.f32 -1.442695, %v143_v53 }
 0x12d   :  { %173 = vpow2.f32 %v170_v54 }
 0x133   :  { %v174_v55 = vpop.eup %173 }
 0x134   :  { %v148_v56 = vadd.f32 1.0, %v174_v55 }
 0x136   :  { %175 = vrcp.f32 %v148_v56  ;;  %v160_v60 = vand.u32 2147483648, %v148_v56  ;;  %v158_v62 = vand.u32 2147483647, %v148_v56  ;;  %vm154_vm2 = vweird.f32 %v148_v56 }
 0x138   :  { %v161_v0 = vor.u32 1.1754944e-38, %v160_v60  ;;  %vm159_vm4 = vcmp.eq.f32.partialorder %v158_v62, 8.507059e+37 }
 0x13c   :  { %v176_v57 = vpop.eup %175 }
 0x13d   :  { %v150_v58 = vmul.f32 %v176_v57, %v148_v56  ;;  %vm155_vm1 = vweird.f32 %v176_v57 }
 0x13e   :  { %vm156_vm3 = vmor %vm154_vm2, %vm155_vm1 }
 0x13f   :  { %v151_v59 = vsub.f32 1.0, %v150_v58 }
 0x141   :  { %v152_v61 = vmul.f32 %v176_v57, %v151_v59 }
 0x143   :  { %v153_v63 = vadd.f32 %v176_v57, %v152_v61 }
 0x145   :  { %v157_v1 = vsel %vm156_vm3, %v176_v57, %v153_v63 }
 0x146   :  { %v162_v2 = vsel %vm159_vm4, %v161_v0, %v157_v1 }
 0x147   :  { %164 = vst [vmem:[%s353_s6] sm:$0x3] %v162_v2 }

</bundles_post_ra>
